<compile_context>
chip_gen: v6e
topology: v6e:2x2x1
jax: 0.10.0
libtpu: 0.0.40
codegen_flags: <defaults>
</compile_context>

<pallas_src>
import jax
import jax.numpy as jnp
from jax.experimental import pallas as pl
from jax.experimental.pallas import tpu as pltpu

LRELU_SLOPE = 0.01
H1, H2 = 300, 100          # logical hidden sizes (from the PyTorch module)
H1_PAD, H2_PAD = 384, 128  # lane-padded hidden sizes
LANE = 128
SUBLANE = 8


def _round_up(n, m):
    return ((n + m - 1) // m) * m


def _leaky_relu(x):
    # max(x, a*x) == leaky_relu(x) for 0 < a < 1.
    return jnp.maximum(x, LRELU_SLOPE * x)


def encoder_kernel(x_ref, w1_ref, b1_ref, w2_ref, b2_ref, w3_ref, b3_ref,
                   out_ref):
    # x / weights are bf16 (MXU operands); accumulate + elementwise in f32.
    h1 = jnp.dot(x_ref[...], w1_ref[...], preferred_element_type=jnp.float32)
    h1 = _leaky_relu(h1 + b1_ref[...])

    h2 = jnp.dot(h1.astype(jnp.bfloat16), w2_ref[...],
                 preferred_element_type=jnp.float32)
    h2 = _leaky_relu(h2 + b2_ref[...])

    h3 = jnp.dot(h2.astype(jnp.bfloat16), w3_ref[...],
                 preferred_element_type=jnp.float32)
    out_ref[...] = (h3 + b3_ref[...]).astype(out_ref.dtype)


def _pad_to(a, shape):
    pads = [(0, s - d) for d, s in zip(a.shape, shape)]
    return jnp.pad(a, pads)


def encoder_forward(x, params, *, block_m=512):
    """x: (batch, input_dim) f32. params: unpadded (in, out)-layout weights."""
    w1, b1, w2, b2, w3, b3 = params
    batch, input_dim = x.shape
    latent_dim = w3.shape[1]

    in_pad = _round_up(max(input_dim, LANE), LANE)
    lat_pad = _round_up(max(latent_dim, LANE), LANE)

    # Batch tile: >=512 rows for big batches (HBM-roofline-friendly); for tiny
    # batches just round up to a sublane multiple so one grid step covers it.
    tm = block_m if batch >= block_m else _round_up(max(batch, SUBLANE), SUBLANE)
    batch_pad = _round_up(batch, tm)
    grid = (pl.cdiv(batch_pad, tm),)

    # Zero-pad everything to lane/sublane multiples; zero padding keeps the
    # real (sliced) outputs bit-identical to the unpadded computation.
    xp = _pad_to(x, (batch_pad, in_pad)).astype(jnp.bfloat16)
    w1p = _pad_to(w1, (in_pad, H1_PAD)).astype(jnp.bfloat16)
    w2p = _pad_to(w2, (H1_PAD, H2_PAD)).astype(jnp.bfloat16)
    w3p = _pad_to(w3, (H2_PAD, lat_pad)).astype(jnp.bfloat16)
    b1p = _pad_to(b1.reshape(1, -1), (1, H1_PAD)).astype(jnp.float32)
    b2p = _pad_to(b2.reshape(1, -1), (1, H2_PAD)).astype(jnp.float32)
    b3p = _pad_to(b3.reshape(1, -1), (1, lat_pad)).astype(jnp.float32)

    flops = 2 * batch_pad * (in_pad * H1_PAD + H1_PAD * H2_PAD + H2_PAD * lat_pad)
    bytes_accessed = (
        xp.size * 2 + w1p.size * 2 + w2p.size * 2 + w3p.size * 2
        + (b1p.size + b2p.size + b3p.size) * 4
        + batch_pad * lat_pad * 4)

    resident = lambda i: (0, 0)   # weights/biases: same block every grid step
    out_pad = pl.pallas_call(
        encoder_kernel,
        out_shape=jax.ShapeDtypeStruct((batch_pad, lat_pad), jnp.float32),
        grid=grid,
        in_specs=[
            pl.BlockSpec((tm, in_pad), lambda i: (i, 0)),       # x tile
            pl.BlockSpec((in_pad, H1_PAD), resident),           # W1
            pl.BlockSpec((1, H1_PAD), resident),                # b1
            pl.BlockSpec((H1_PAD, H2_PAD), resident),           # W2
            pl.BlockSpec((1, H2_PAD), resident),                # b2
            pl.BlockSpec((H2_PAD, lat_pad), resident),          # W3
            pl.BlockSpec((1, lat_pad), resident),               # b3
        ],
        out_specs=pl.BlockSpec((tm, lat_pad), lambda i: (i, 0)),
        compiler_params=pltpu.CompilerParams(
            dimension_semantics=("parallel",)),
        cost_estimate=pl.CostEstimate(flops=flops, transcendentals=0,
                                      bytes_accessed=bytes_accessed),
    )(xp, w1p, b1p, w2p, b2p, w3p, b3p)

    return out_pad[:batch, :latent_dim].astype(x.dtype)


def init_params(key, input_dim, latent_dim):
    """Deterministic init mimicking nn.Linear (uniform +/- 1/sqrt(fan_in)).
    Weights stored transposed vs PyTorch: (in_features, out_features)."""
    dims = [(input_dim, H1), (H1, H2), (H2, latent_dim)]
    params = []
    for i, (fan_in, fan_out) in enumerate(dims):
        kw, kb, key = jax.random.split(jax.random.fold_in(key, i), 3)
        bound = 1.0 / jnp.sqrt(float(fan_in))
        w = jax.random.uniform(kw, (fan_in, fan_out), jnp.float32,
                               minval=-bound, maxval=bound)
        b = jax.random.uniform(kb, (fan_out,), jnp.float32,
                               minval=-bound, maxval=bound)
        params += [w, b]
    return tuple(params)


def reference_forward(x, params):
    """Plain-JAX f32 reference for correctness checking."""
    w1, b1, w2, b2, w3, b3 = params
    h1 = _leaky_relu(x @ w1 + b1)
    h2 = _leaky_relu(h1 @ w2 + b2)
    return h2 @ w3 + b3


if __name__ == "__main__":
    input_dim = 32
    latent_dim = 8
    batch = 2

    key = jax.random.PRNGKey(0)
    k_x, k_p = jax.random.split(key)
    x = jax.random.normal(k_x, (batch, input_dim), jnp.float32)
    params = init_params(k_p, input_dim, latent_dim)

    out = encoder_forward(x, params)
    out = jax.block_until_ready(out)

    ref = reference_forward(x, params)
    assert out.shape == (batch, latent_dim)
    # bf16 matmul operands (f32 accumulate) -> loose-ish tolerance vs f32 ref.
    assert jnp.allclose(out, ref, atol=5e-2, rtol=5e-2), (
        f"max abs diff {jnp.max(jnp.abs(out - ref))}")

    print("KERNEL_OK")
</pallas_src>

<mosaic_0001>
module attributes {stable_mosaic.version = 11 : i64} {
  func.func @encoder_kernel(%arg0: i32, %arg1: memref<8x128xbf16, #tpu.memory_space<vmem>>, %arg2: memref<128x384xbf16, #tpu.memory_space<vmem>>, %arg3: memref<1x384xf32, #tpu.memory_space<vmem>>, %arg4: memref<384x128xbf16, #tpu.memory_space<vmem>>, %arg5: memref<1x128xf32, #tpu.memory_space<vmem>>, %arg6: memref<128x128xbf16, #tpu.memory_space<vmem>>, %arg7: memref<1x128xf32, #tpu.memory_space<vmem>>, %arg8: memref<8x128xf32, #tpu.memory_space<vmem>>) attributes {dimension_semantics = [#tpu.dimension_semantics<parallel>], iteration_bounds = array<i64: 1>, scalar_prefetch = 0 : i64, scratch_operands = 0 : i64, tpu.core_type = #tpu.core_type<tc>, window_params = [{transform_indices = @transform_0, window_bounds = array<i64: 8, 128>}, {pipeline_mode = #tpu.pipeline_mode<synchronous>, transform_indices = @transform_1, window_bounds = array<i64: 128, 384>}, {pipeline_mode = #tpu.pipeline_mode<synchronous>, transform_indices = @transform_2, window_bounds = array<i64: 1, 384>}, {pipeline_mode = #tpu.pipeline_mode<synchronous>, transform_indices = @transform_3, window_bounds = array<i64: 384, 128>}, {pipeline_mode = #tpu.pipeline_mode<synchronous>, transform_indices = @transform_4, window_bounds = array<i64: 1, 128>}, {pipeline_mode = #tpu.pipeline_mode<synchronous>, transform_indices = @transform_5, window_bounds = array<i64: 128, 128>}, {pipeline_mode = #tpu.pipeline_mode<synchronous>, transform_indices = @transform_6, window_bounds = array<i64: 1, 128>}, {transform_indices = @transform_7, window_bounds = array<i64: 8, 128>}]} {
    %c0 = arith.constant 0 : index
    %c0_0 = arith.constant 0 : index
    %0 = vector.load %arg1[%c0, %c0_0] : memref<8x128xbf16, #tpu.memory_space<vmem>>, vector<8x128xbf16>
    %c0_1 = arith.constant 0 : index
    %c0_2 = arith.constant 0 : index
    %1 = vector.load %arg2[%c0_1, %c0_2] : memref<128x384xbf16, #tpu.memory_space<vmem>>, vector<128x384xbf16>
    %cst = arith.constant dense<0.000000e+00> : vector<8x384xf32>
    %2 = tpu.matmul %0, %1, %cst {dimension_numbers = #tpu.dot_dimension_numbers<[1], [0], [0], [1], [0, 0, 1, 1], [], []>} : vector<8x128xbf16>, vector<128x384xbf16>, vector<8x384xf32> -> vector<8x384xf32>
    %c0_3 = arith.constant 0 : index
    %c0_4 = arith.constant 0 : index
    %3 = vector.load %arg3[%c0_3, %c0_4] : memref<1x384xf32, #tpu.memory_space<vmem>>, vector<1x384xf32>
    %4 = vector.broadcast %3 : vector<1x384xf32> to vector<8x384xf32>
    %5 = arith.addf %2, %4 : vector<8x384xf32>
    %cst_5 = arith.constant 0.00999999977 : f32
    %6 = vector.broadcast %cst_5 : f32 to vector<8x384xf32>
    %7 = arith.mulf %6, %5 : vector<8x384xf32>
    %8 = arith.maximumf %5, %7 : vector<8x384xf32>
    %9 = arith.truncf %8 : vector<8x384xf32> to vector<8x384xbf16>
    %c0_6 = arith.constant 0 : index
    %c0_7 = arith.constant 0 : index
    %10 = vector.load %arg4[%c0_6, %c0_7] : memref<384x128xbf16, #tpu.memory_space<vmem>>, vector<384x128xbf16>
    %cst_8 = arith.constant dense<0.000000e+00> : vector<8x128xf32>
    %11 = tpu.matmul %9, %10, %cst_8 {dimension_numbers = #tpu.dot_dimension_numbers<[1], [0], [0], [1], [0, 0, 1, 1], [], []>} : vector<8x384xbf16>, vector<384x128xbf16>, vector<8x128xf32> -> vector<8x128xf32>
    %c0_9 = arith.constant 0 : index
    %c0_10 = arith.constant 0 : index
    %12 = vector.load %arg5[%c0_9, %c0_10] : memref<1x128xf32, #tpu.memory_space<vmem>>, vector<1x128xf32>
    %13 = vector.broadcast %12 : vector<1x128xf32> to vector<8x128xf32>
    %14 = arith.addf %11, %13 : vector<8x128xf32>
    %cst_11 = arith.constant 0.00999999977 : f32
    %15 = vector.broadcast %cst_11 : f32 to vector<8x128xf32>
    %16 = arith.mulf %15, %14 : vector<8x128xf32>
    %17 = arith.maximumf %14, %16 : vector<8x128xf32>
    %18 = arith.truncf %17 : vector<8x128xf32> to vector<8x128xbf16>
    %c0_12 = arith.constant 0 : index
    %c0_13 = arith.constant 0 : index
    %19 = vector.load %arg6[%c0_12, %c0_13] : memref<128x128xbf16, #tpu.memory_space<vmem>>, vector<128x128xbf16>
    %cst_14 = arith.constant dense<0.000000e+00> : vector<8x128xf32>
    %20 = tpu.matmul %18, %19, %cst_14 {dimension_numbers = #tpu.dot_dimension_numbers<[1], [0], [0], [1], [0, 0, 1, 1], [], []>} : vector<8x128xbf16>, vector<128x128xbf16>, vector<8x128xf32> -> vector<8x128xf32>
    %c0_15 = arith.constant 0 : index
    %c0_16 = arith.constant 0 : index
    %21 = vector.load %arg7[%c0_15, %c0_16] : memref<1x128xf32, #tpu.memory_space<vmem>>, vector<1x128xf32>
    %22 = vector.broadcast %21 : vector<1x128xf32> to vector<8x128xf32>
    %23 = arith.addf %20, %22 : vector<8x128xf32>
    %c0_17 = arith.constant 0 : index
    %c0_18 = arith.constant 0 : index
    %24 = vector.load %arg8[%c0_17, %c0_18] : memref<8x128xf32, #tpu.memory_space<vmem>>, vector<8x128xf32>
    tpu.vector_store %arg8[%c0_17, %c0_18], %23 {strides = array<i32>} : memref<8x128xf32, #tpu.memory_space<vmem>>, vector<8x128xf32>,
    return
  }
  func.func @transform_0(%arg0: i32) -> (i32, i32) {
    %c0_i32 = arith.constant 0 : i32
    %c0_i32_0 = arith.constant 0 : i32
    return %arg0, %c0_i32 : i32, i32
  }
  func.func @transform_1(%arg0: i32) -> (i32, i32) {
    %c0_i32 = arith.constant 0 : i32
    %c0_i32_0 = arith.constant 0 : i32
    %c0_i32_1 = arith.constant 0 : i32
    return %c0_i32, %c0_i32_0 : i32, i32
  }
  func.func @transform_2(%arg0: i32) -> (i32, i32) {
    %c0_i32 = arith.constant 0 : i32
    %c0_i32_0 = arith.constant 0 : i32
    %c0_i32_1 = arith.constant 0 : i32
    return %c0_i32, %c0_i32_0 : i32, i32
  }
  func.func @transform_3(%arg0: i32) -> (i32, i32) {
    %c0_i32 = arith.constant 0 : i32
    %c0_i32_0 = arith.constant 0 : i32
    %c0_i32_1 = arith.constant 0 : i32
    return %c0_i32, %c0_i32_0 : i32, i32
  }
  func.func @transform_4(%arg0: i32) -> (i32, i32) {
    %c0_i32 = arith.constant 0 : i32
    %c0_i32_0 = arith.constant 0 : i32
    %c0_i32_1 = arith.constant 0 : i32
    return %c0_i32, %c0_i32_0 : i32, i32
  }
  func.func @transform_5(%arg0: i32) -> (i32, i32) {
    %c0_i32 = arith.constant 0 : i32
    %c0_i32_0 = arith.constant 0 : i32
    %c0_i32_1 = arith.constant 0 : i32
    return %c0_i32, %c0_i32_0 : i32, i32
  }
  func.func @transform_6(%arg0: i32) -> (i32, i32) {
    %c0_i32 = arith.constant 0 : i32
    %c0_i32_0 = arith.constant 0 : i32
    %c0_i32_1 = arith.constant 0 : i32
    return %c0_i32, %c0_i32_0 : i32, i32
  }
  func.func @transform_7(%arg0: i32) -> (i32, i32) {
    %c0_i32 = arith.constant 0 : i32
    %c0_i32_0 = arith.constant 0 : i32
    return %arg0, %c0_i32 : i32, i32
  }
}

</mosaic_0001>

<bundles_post_ra>
// kernel: tpu_custom_call.1
= control target key start
LH: loop header
LB: loop body
LE: loop exit
PB: predicated region body
PF: predicated region fallthrough
CT: control target
= control target key end

     0   :  { %12 = vsyncpa [#allocation3], 0  ;;  %s1217_s0 = inlined_call_operand.hbm [shape: bf16[8,128], index: 0, kind: input, shape index: {}]   ;;  %s1218_s1 = inlined_call_operand.hbm [shape: bf16[128,384], index: 1, kind: input, shape index: {}]   ;;  %s1219_s2 = inlined_call_operand.vmem [shape: f32[1,384], index: 2, kind: input, shape index: {}]   ;;  %s1220_s3 = inlined_call_operand.hbm [shape: bf16[384,128], index: 3, kind: input, shape index: {}]   ;;  %s1221_s4 = inlined_call_operand.vmem [shape: f32[1,128], index: 4, kind: input, shape index: {}]   ;;  %s1222_s5 = inlined_call_operand.hbm [shape: bf16[128,128], index: 5, kind: input, shape index: {}]   ;;  %s1223_s6 = inlined_call_operand.vmem [shape: f32[1,128], index: 6, kind: input, shape index: {}]   ;;  %s1224_s7 = inlined_call_operand.hbm [shape: f32[8,128], index: 7, kind: output, shape index: {}]  }
   0x1   :  { %13 = vsyncpa [#allocation6], 0 }
   0x2   :  { %14 = vsyncpa [#allocation9], 0 }
   0x3   :  { %15 = vsyncpa [#allocation4], 0  ;;  %s1111_s24 = smov [#allocation5]  }
   0x4   :  { %s31_s25 = sshll.u32 %s1111_s24, 4  ;;  %s32_s25 = int_to_ptr.vmem [resolvable:$true] %s31_s25 }
   0x5   :  { %s1011_s26 = scalar_lea.vmem %s32_s25, 3072  ;;  %p1016_p1 = scmp.lt.s32.totalorder %s32_s25, %s32_s25 }
   0x6   :  { %p1012_p0 = scmp.ne.s32.totalorder %s32_s25, %s1011_s26  ;;  %p1017_p2 = scmp.lt.s32.totalorder %s1011_s26, %s1011_s26 }
   0x8   :  { %p1018_p3 = por %p1017_p2, %p1016_p1 }
   0xa   :  { %p1019_p4 = pnand %p1018_p3, %p1012_p0 }
   0xc   :  { %1022 = shalt.err (!%p1019_p4)
}
   0xd   :  { %s1112_s27 = smov 192   ;;  %s1113_s28 = smov 12  }
   0xe   :  { %37 = dma.hbm_to_vmem [thread:$0]  %s1218_s1, 3072, %s32_s25, [#allocation6], %s1112_s27, %s1112_s27, %s1113_s28  }
   0xf   :  { %s1114_s8 = smov [#allocation2]   ;;  %s1115_s10 = smov [#allocation7]  }
  0x10   :  { %s22_s9 = sshll.u32 %s1114_s8, 4  ;;  %s45_s11 = sshll.u32 %s1115_s10, 4  ;;  %s23_s9 = int_to_ptr.vmem [resolvable:$true] %s22_s9  ;;  %s46_s11 = int_to_ptr.vmem [resolvable:$true] %s45_s11 }
  0x11   :  { %s1031_s12 = scalar_lea.vmem %s23_s9, 64  ;;  %p1036_p6 = scmp.lt.s32.totalorder %s23_s9, %s23_s9 }
  0x12   :  { %p1032_p5 = scmp.ne.s32.totalorder %s23_s9, %s1031_s12  ;;  %p1037_p7 = scmp.lt.s32.totalorder %s1031_s12, %s1031_s12 }
  0x14   :  { %p1038_p8 = por %p1037_p7, %p1036_p6 }
  0x16   :  { %p1039_p9 = pnand %p1038_p8, %p1032_p5 }
  0x18   :  { %1042 = shalt.err (!%p1039_p9)
}
  0x19   :  { %25 = dma.hbm_to_vmem [thread:$0]  %s1217_s0, 64, %s23_s9, [#allocation3]  }
  0x1a   :  { %s1051_s15 = scalar_lea.vmem %s46_s11, 3072  ;;  %p1056_p11 = scmp.lt.s32.totalorder %s46_s11, %s46_s11 }
  0x1b   :  { %p1052_p10 = scmp.ne.s32.totalorder %s46_s11, %s1051_s15  ;;  %p1057_p12 = scmp.lt.s32.totalorder %s1051_s15, %s1051_s15 }
  0x1d   :  { %p1058_p13 = por %p1057_p12, %p1056_p11 }
  0x1f   :  { %p1059_p0 = pnand %p1058_p13, %p1052_p10 }
  0x21   :  { %1062 = shalt.err (!%p1059_p0)
}
  0x22   :  { %s1116_s1 = smov 64   ;;  %s1117_s16 = smov 4  }
  0x23   :  { %51 = dma.hbm_to_vmem [thread:$0]  %s1220_s3, 3072, %s46_s11, [#allocation6], %s1116_s1, %s1116_s1, %s1117_s16  }
  0x24   :  { %s1118_s19 = smov [#allocation8]  }
  0x25   :  { %s59_s20 = sshll.u32 %s1118_s19, 4  ;;  %s60_s20 = int_to_ptr.vmem [resolvable:$true] %s59_s20 }
  0x26   :  { %s1071_s21 = scalar_lea.vmem %s60_s20, 1024  ;;  %p1076_p2 = scmp.lt.s32.totalorder %s60_s20, %s60_s20 }
  0x27   :  { %p1072_p1 = scmp.ne.s32.totalorder %s60_s20, %s1071_s21  ;;  %p1077_p3 = scmp.lt.s32.totalorder %s1071_s21, %s1071_s21 }
  0x29   :  { %p1078_p4 = por %p1077_p3, %p1076_p2 }
  0x2b   :  { %p1079_p5 = pnand %p1078_p4, %p1072_p1 }
  0x2d   :  { %1082 = shalt.err (!%p1079_p5)
}
  0x2e   :  { %65 = dma.hbm_to_vmem [thread:$0]  %s1222_s5, 1024, %s60_s20, [#allocation9], %s1116_s1, %s1116_s1, %s1117_s16  }
  0x2f   :  { %1103 = dma.done.wait [#allocation3], 64  }
  0x30   :  { %1104 = vsyncadd [#allocation3], 4294967232 }
  0x31   :  { %1105 = dma.done.wait [#allocation6], 6144  }
  0x32   :  { %1106 = vsyncadd [#allocation6], 4294961152 }
  0x33   :  { %1107 = dma.done.wait [#allocation9], 1024  }
  0x34   :  { %1108 = vsyncadd [#allocation9], 4294966272  ;;  %v1119_v0 = vmov 0.0   ;;  %v1120_v1 = vmov 0   ;;  %vm1121_vm0 = vmmov 0   ;;  %v972_v26 = vld [vmem:[#allocation7 + $0x78] sm:$0xff]   ;;  %v116_v51 = vlaneseq }
  0x35   :  { %867 = vmatprep.subr.bf16.mxu1 %v1119_v0  ;;  %291 = vmatprep.mubr.bf16.mxu0 %v1120_v1  ;;  %v939_v2 = vld [vmem:[#allocation5 + $0xac] ss:$12 sps:$4 sm:$0xff]   ;;  %v941_v3 = vld [vmem:[#allocation5 + $0xa8] ss:$12 sps:$4 sm:$0xff]   ;;  %v942_v4 = vld [vmem:[#allocation5 + $0xb0] ss:$12 sps:$4 sm:$0xff]  }
  0x36   :  { %883 = vmatprep.mubr.msk.bf16.mxu1 %vm1121_vm0, %v1119_v0  ;;  %259 = vmatprep.subr.bf16.mxu0 %v939_v2  ;;  %v943_v5 = vld [vmem:[#allocation5 + $0x94] ss:$12 sps:$4 sm:$0xff]   ;;  %v945_v6 = vld [vmem:[#allocation5 + $0x90] ss:$12 sps:$4 sm:$0xff]   ;;  %v946_v7 = vld [vmem:[#allocation5 + $0x98] ss:$12 sps:$4 sm:$0xff]  }
  0x37   :  { %260 = vmatpush1.bf16.msra.mxu0 %v941_v3  ;;  %868 = vmatpush3.bf16.msra.mxu1 %v942_v4  ;;  %v947_v8 = vld [vmem:[#allocation5 + $0x7c] ss:$12 sps:$4 sm:$0xff]   ;;  %v949_v9 = vld [vmem:[#allocation5 + $0x78] ss:$12 sps:$4 sm:$0xff]   ;;  %v950_v10 = vld [vmem:[#allocation5 + $0x80] ss:$12 sps:$4 sm:$0xff]  }
  0x38   :  { %261 = vmatprep.subr.bf16.mxu0 %v943_v5  ;;  %869 = vmatprep.subr.bf16.mxu1 %v1119_v0  ;;  %v951_v11 = vld [vmem:[#allocation5 + $0x64] ss:$12 sps:$4 sm:$0xff]   ;;  %v953_v12 = vld [vmem:[#allocation5 + $0x60] ss:$12 sps:$4 sm:$0xff]   ;;  %v954_v13 = vld [vmem:[#allocation5 + $0x68] ss:$12 sps:$4 sm:$0xff]  }
  0x39   :  { %v955_v14 = vld [vmem:[#allocation5 + $0x4c] ss:$12 sps:$4 sm:$0xff]   ;;  %v957_v15 = vld [vmem:[#allocation5 + $0x48] ss:$12 sps:$4 sm:$0xff]   ;;  %v958_v16 = vld [vmem:[#allocation5 + $0x50] ss:$12 sps:$4 sm:$0xff]  }
  0x3a   :  { %v959_v17 = vld [vmem:[#allocation5 + $0x34] ss:$12 sps:$4 sm:$0xff]   ;;  %v961_v18 = vld [vmem:[#allocation5 + $0x30] ss:$12 sps:$4 sm:$0xff]   ;;  %v962_v19 = vld [vmem:[#allocation5 + $0x38] ss:$12 sps:$4 sm:$0xff]  }
  0x3b   :  { %262 = vmatpush1.bf16.msra.mxu0 %v945_v6  ;;  %870 = vmatpush3.bf16.msra.mxu1 %v946_v7  ;;  %v963_v20 = vld [vmem:[#allocation5 + $0x1c] ss:$12 sps:$4 sm:$0xff]   ;;  %v965_v21 = vld [vmem:[#allocation5 + $0x18] ss:$12 sps:$4 sm:$0xff]   ;;  %v966_v22 = vld [vmem:[#allocation5 + $0x20] ss:$12 sps:$4 sm:$0xff]  }
  0x3c   :  { %263 = vmatprep.subr.bf16.mxu0 %v947_v8  ;;  %871 = vmatprep.subr.bf16.mxu1 %v1119_v0  ;;  %v967_v23 = vld [vmem:[#allocation5 + $0x4] ss:$12 sps:$4 sm:$0xff]   ;;  %v969_v24 = vld [vmem:[#allocation5] ss:$12 sps:$4 sm:$0xff]   ;;  %v970_v25 = vld [vmem:[#allocation5 + $0x8] ss:$12 sps:$4 sm:$0xff]  }
  0x3d   :  { %v81_v27 = vld [vmem:[#allocation2] sm:$0xf]  ;;  %v975_v30 = vld [vmem:[#allocation7 + $0x70] sm:$0xff]   ;;  %v978_v33 = vld [vmem:[#allocation7 + $0x68] sm:$0xff]   ;;  %v117_v52 = vshrl.u32 %v116_v51, 7  ;;  %s1122_s26 = smov [#allocation10]  }
  0x3e   :  { %v971_v28 = vld [vmem:[#allocation7 + $0xb8] sm:$0xff]   ;;  %v974_v31 = vld [vmem:[#allocation7 + $0xb0] sm:$0xff]   ;;  %v979_v34 = vld [vmem:[#allocation7 + $0x28] sm:$0xff]   ;;  %s749_s27 = sshll.u32 %s1122_s26, 4  ;;  %s750_s27 = int_to_ptr.vmem [resolvable:$true] %s749_s27 }
  0x3f   :  { %264 = vmatpush1.bf16.msra.mxu0 %v949_v9  ;;  %872 = vmatpush3.bf16.msra.mxu1 %v950_v10  ;;  %v973_v29 = vld [vmem:[#allocation7 + $0x38] sm:$0xff]   ;;  %v976_v32 = vld [vmem:[#allocation7 + $0x30] sm:$0xff]   ;;  %v977_v35 = vld [vmem:[#allocation7 + $0xa8] sm:$0xff]   ;;  %v118_v53 = vsub.s32 0, %v117_v52  ;;  %v126_v55 = vsub.s32 2, %v117_v52  ;;  %v122_v56 = vsub.s32 1, %v117_v52  ;;  %p1088_p7 = scmp.lt.s32.totalorder %s750_s27, %s750_s27 }
  0x40   :  { %265 = vmatprep.subr.bf16.mxu0 %v951_v11  ;;  %873 = vmatprep.subr.bf16.mxu1 %v1119_v0  ;;  %v981_v36 = vld [vmem:[#allocation7 + $0x60] sm:$0xff]   ;;  %v984_v39 = vld [vmem:[#allocation7 + $0x58] sm:$0xff]   ;;  %v986_v42 = vld [vmem:[#allocation7 + $0x90] sm:$0xff]  }
  0x41   :  { %v982_v37 = vld [vmem:[#allocation7 + $0x20] sm:$0xff]   ;;  %v985_v40 = vld [vmem:[#allocation7 + $0x18] sm:$0xff]   ;;  %v987_v43 = vld [vmem:[#allocation7 + $0x50] sm:$0xff]  }
  0x42   :  { %v980_v38 = vld [vmem:[#allocation7 + $0xa0] sm:$0xff]   ;;  %v983_v41 = vld [vmem:[#allocation7 + $0x98] sm:$0xff]   ;;  %v988_v44 = vld [vmem:[#allocation7 + $0x10] sm:$0xff]  }
  0x43   :  { %266 = vmatpush1.bf16.msra.mxu0 %v953_v12  ;;  %874 = vmatpush3.bf16.msra.mxu1 %v954_v13  ;;  %v989_v45 = vld [vmem:[#allocation7 + $0x88] sm:$0xff]   ;;  %v992_v48 = vld [vmem:[#allocation7 + $0x80] sm:$0xff]   ;;  %v114_v54 = vld [vmem:[%s1219_s2] sm:$0x7] }
  0x44   :  { %267 = vmatprep.subr.bf16.mxu0 %v955_v14  ;;  %875 = vmatprep.subr.bf16.mxu1 %v1119_v0  ;;  %v990_v46 = vld [vmem:[#allocation7 + $0x48] sm:$0xff]   ;;  %v993_v49 = vld [vmem:[#allocation7 + $0x40] sm:$0xff]   ;;  %v119_v57 = vrot.slane %v114_v54, %v118_v53  ;;  %v127_v58 = vrot.slane %v114_v54, %v126_v55  ;;  %v123_v59 = vrot.slane %v114_v54, %v122_v56 }
  0x45   :  { %v991_v47 = vld [vmem:[#allocation7 + $0x8] sm:$0xff]   ;;  %v994_v50 = vld [vmem:[#allocation7] sm:$0xff]  }
  0x47   :  { %268 = vmatpush1.bf16.msra.mxu0 %v957_v15  ;;  %876 = vmatpush3.bf16.msra.mxu1 %v958_v16  ;;  %v995_v16 = vld [vmem:[#allocation8 + $0x38] sm:$0xff]  }
  0x48   :  { %269 = vmatprep.subr.bf16.mxu0 %v959_v17  ;;  %877 = vmatprep.subr.bf16.mxu1 %v1119_v0 }
  0x4b   :  { %270 = vmatpush1.bf16.msra.mxu0 %v961_v18  ;;  %878 = vmatpush3.bf16.msra.mxu1 %v962_v19  ;;  %v996_v18 = vld [vmem:[#allocation8 + $0x30] sm:$0xff]   ;;  %v997_v19 = vld [vmem:[#allocation8 + $0x28] sm:$0xff]  }
  0x4c   :  { %271 = vmatprep.subr.bf16.mxu0 %v963_v20  ;;  %879 = vmatprep.subr.bf16.mxu1 %v1119_v0  ;;  %v998_v20 = vld [vmem:[#allocation8 + $0x20] sm:$0xff]  }
  0x4f   :  { %272 = vmatpush1.bf16.msra.mxu0 %v965_v21  ;;  %880 = vmatpush3.bf16.msra.mxu1 %v966_v22  ;;  %v999_v21 = vld [vmem:[#allocation8 + $0x18] sm:$0xff]   ;;  %v1000_v22 = vld [vmem:[#allocation8 + $0x10] sm:$0xff]  }
  0x50   :  { %273 = vmatprep.subr.bf16.mxu0 %v967_v23  ;;  %881 = vmatprep.subr.bf16.mxu1 %v1119_v0  ;;  %v1001_v23 = vld [vmem:[#allocation8 + $0x8] sm:$0xff]  }
  0x53   :  { %274 = vmatpush1.bf16.msra.mxu0 %v969_v24  ;;  %882 = vmatpush3.bf16.msra.mxu1 %v970_v25  ;;  %v1002_v24 = vld [vmem:[#allocation8] sm:$0xff]  }
  0x54   :  { %827 = vmatprep.subr.bf16.mxu0 %v972_v26  ;;  %887 = vmatprep.subr.bf16.mxu1 %v1119_v0 }
  0x56   :  { %292 = vmatmul.mubr.bf16.vlgmr.msra.gmra.mxu0 %v81_v27  ;;  %884 = vmatmul.mubr.bf16.vlgmr.msra.gmra.mxu1 %v81_v27 }
  0x57   :  { %828 = vmatpush3.bf16.msra.mxu0 %v973_v29  ;;  %888 = vmatpush3.bf16.msra.mxu1 %v971_v28  ;;  %v784_v28 = vld [vmem:[%s1221_s4] ss:$0 sm:$0xff]  ;;  %s1083_s4 = scalar_lea.vmem %s750_s27, 128 }
  0x58   :  { %829 = vmatprep.subr.bf16.mxu0 %v975_v30  ;;  %889 = vmatprep.subr.bf16.mxu1 %v1119_v0  ;;  %p1084_p6 = scmp.ne.s32.totalorder %s750_s27, %s1083_s4  ;;  %p1089_p8 = scmp.lt.s32.totalorder %s1083_s4, %s1083_s4 }
  0x59   :  { %903 = vmatprep.mubr.msk.bf16.mxu1 %vm1121_vm0, %v1119_v0 }
  0x5a   :  { %p1090_p9 = por %p1089_p8, %p1088_p7 }
  0x5b   :  { %830 = vmatpush3.bf16.msra.mxu0 %v976_v32  ;;  %890 = vmatpush3.bf16.msra.mxu1 %v974_v31 }
  0x5c   :  { %831 = vmatprep.subr.bf16.mxu0 %v978_v33  ;;  %891 = vmatprep.subr.bf16.mxu1 %v1119_v0  ;;  %p1091_p10 = pnand %p1090_p9, %p1084_p6 }
  0x5f   :  { %832 = vmatpush3.bf16.msra.mxu0 %v979_v34  ;;  %892 = vmatpush3.bf16.msra.mxu1 %v977_v35 }
  0x60   :  { %833 = vmatprep.subr.bf16.mxu0 %v981_v36  ;;  %893 = vmatprep.subr.bf16.mxu1 %v1119_v0 }
  0x63   :  { %834 = vmatpush3.bf16.msra.mxu0 %v982_v37  ;;  %894 = vmatpush3.bf16.msra.mxu1 %v980_v38 }
  0x64   :  { %835 = vmatprep.subr.bf16.mxu0 %v984_v39  ;;  %895 = vmatprep.subr.bf16.mxu1 %v1119_v0  ;;  %v809_v39 = vld [vmem:[%s1223_s6] ss:$0 sm:$0xff] }
  0x67   :  { %836 = vmatpush3.bf16.msra.mxu0 %v985_v40  ;;  %896 = vmatpush3.bf16.msra.mxu1 %v983_v41 }
  0x68   :  { %897 = vmatprep.subr.bf16.mxu1 %v1119_v0  ;;  %837 = vmatprep.subr.bf16.mxu0 %v987_v43 }
  0x6b   :  { %898 = vmatpush3.bf16.msra.mxu1 %v986_v42  ;;  %838 = vmatpush3.bf16.msra.mxu0 %v988_v44 }
  0x6c   :  { %899 = vmatprep.subr.bf16.mxu1 %v1119_v0  ;;  %839 = vmatprep.subr.bf16.mxu0 %v990_v46 }
  0x6f   :  { %900 = vmatpush3.bf16.msra.mxu1 %v989_v45  ;;  %840 = vmatpush3.bf16.msra.mxu0 %v991_v47 }
  0x70   :  { %901 = vmatprep.subr.bf16.mxu1 %v1119_v0  ;;  %841 = vmatprep.subr.bf16.mxu0 %v993_v49 }
  0x73   :  { %902 = vmatpush3.bf16.msra.mxu1 %v992_v48  ;;  %842 = vmatpush3.bf16.msra.mxu0 %v994_v50 }
  0x74   :  { %907 = vmatprep.subr.bf16.mxu0 %v1119_v0 }
 0x116   :  { %v293_v60 = vpop.f32.mrf.mxu0  ;;  %v334_v62 = vpop.f32.mrf.mxu1 }
 0x117   :  { %v294_v61 = vadd.f32 %v293_v60, %v119_v57  ;;  %v335_v63 = vadd.f32 %v334_v62, %v127_v58 }
 0x118   :  { %v295_v1 = vpop.f32.mrf.mxu0  ;;  %v885_v4 = vpop.f32.mrf.mxu1 }
 0x119   :  { %v340_v2 = vmul.f32 0.01, %v294_v61  ;;  %v296_v3 = vadd.f32 %v295_v1, %v123_v59  ;;  %v342_v5 = vmul.f32 0.01, %v335_v63 }
 0x11a   :  { %v297_v6 = vpop.f32.mrf.mxu0  ;;  %v337_v8 = vpop.f32.mrf.mxu1 }
 0x11b   :  { %v341_v7 = vmul.f32 0.01, %v296_v3  ;;  %v343_v9 = vmax.f32 %v294_v61, %v340_v2  ;;  %v345_v10 = vmax.f32 %v335_v63, %v342_v5 }
 0x11c   :  { %v298_v11 = vpop.f32.mrf.mxu0  ;;  %v886_v13 = vpop.f32.mrf.mxu1 }
 0x11d   :  { %v344_v12 = vmax.f32 %v296_v3, %v341_v7  ;;  %v348_v14 = vpack.c.bf16 %v345_v10, %v345_v10  ;;  %v346_v17 = vpack.c.bf16 %v343_v9, %v343_v9 }
 0x11f   :  { %v347_v15 = vpack.c.bf16 %v344_v12, %v344_v12  ;;  %904 = vmatmul.mubr.bf16.vlgmr.msra.gmra.mxu1 %v348_v14 }
 0x121   :  { %580 = vmatprep.mubr.bf16.mxu0 %v347_v15 }
 0x122   :  { %581 = vmatmul.mubr.bf16.vlgmr.msra.gmra.mxu0 %v346_v17 }
 0x123   :  { %908 = vmatpush3.bf16.msra.mxu0 %v995_v16  ;;  %923 = vmatprep.mubr.msk.bf16.mxu0 %vm1121_vm0, %v1119_v0 }
 0x124   :  { %909 = vmatprep.subr.bf16.mxu0 %v1119_v0 }
 0x127   :  { %910 = vmatpush3.bf16.msra.mxu0 %v996_v18 }
 0x128   :  { %911 = vmatprep.subr.bf16.mxu0 %v1119_v0 }
 0x12b   :  { %912 = vmatpush3.bf16.msra.mxu0 %v997_v19 }
 0x12c   :  { %913 = vmatprep.subr.bf16.mxu0 %v1119_v0 }
 0x12f   :  { %914 = vmatpush3.bf16.msra.mxu0 %v998_v20 }
 0x130   :  { %915 = vmatprep.subr.bf16.mxu0 %v1119_v0 }
 0x133   :  { %916 = vmatpush3.bf16.msra.mxu0 %v999_v21 }
 0x134   :  { %917 = vmatprep.subr.bf16.mxu0 %v1119_v0 }
 0x137   :  { %918 = vmatpush3.bf16.msra.mxu0 %v1000_v22 }
 0x138   :  { %919 = vmatprep.subr.bf16.mxu0 %v1119_v0 }
 0x13b   :  { %920 = vmatpush3.bf16.msra.mxu0 %v1001_v23 }
 0x13c   :  { %921 = vmatprep.subr.bf16.mxu0 %v1119_v0 }
 0x13f   :  { %922 = vmatpush3.bf16.msra.mxu0 %v1002_v24 }
 0x1df   :  { %v622_v25 = vpop.f32.mrf.mxu1 }
 0x1e1   :  { %v905_v27 = vpop.f32.mrf.mxu1 }
 0x1e2   :  { %v843_v26 = vpop.f32.mrf.mxu0 }
 0x1e3   :  { %v625_v30 = vpop.f32.mrf.mxu1 }
 0x1e4   :  { %v844_v29 = vpop.f32.mrf.mxu0 }
 0x1e5   :  { %v845_v31 = vadd.f32 %v844_v29, %v843_v26  ;;  %v906_v33 = vpop.f32.mrf.mxu1 }
 0x1e6   :  { %v846_v32 = vpop.f32.mrf.mxu0 }
 0x1e7   :  { %v583_v34 = vadd.f32 %v845_v31, %v784_v28 }
 0x1e8   :  { %v847_v35 = vpop.f32.mrf.mxu0 }
 0x1e9   :  { %v623_v36 = vadd.f32 %v622_v25, %v583_v34 }
 0x1eb   :  { %v628_v37 = vmul.f32 0.01, %v623_v36 }
 0x1ed   :  { %v629_v38 = vmax.f32 %v623_v36, %v628_v37 }
 0x1ef   :  { %v630_v0 = vpack.c.bf16 %v629_v38, %v629_v38 }
 0x1f1   :  { %924 = vmatmul.mubr.bf16.vlgmr.msra.gmra.mxu0 %v630_v0 }
 0x2b1   :  { %v736_v40 = vpop.f32.mrf.mxu0 }
 0x2b2   :  { %v737_v41 = vadd.f32 %v809_v39, %v736_v40 }
 0x2b3   :  { %v925_v42 = vpop.f32.mrf.mxu0 }
 0x2b4   :  { %742 = vst [vmem:[#allocation10] sm:$0xff] %v737_v41 }
 0x2b5   :  { %v739_v43 = vpop.f32.mrf.mxu0 }
 0x2b6   :  { %1094 = shalt.err (!%p1091_p10)
}
 0x2b7   :  { %752 = dma.vmem_to_hbm [thread:$0]  %s750_s27, 128, %s1224_s7, [#allocation4]   ;;  %v926_v44 = vpop.f32.mrf.mxu0 }
 0x2b8   :  { %1109 = dma.done.wait [#allocation4], 128  }
 0x2b9   :  { %1110 = vsyncadd [#allocation4], 4294967168 }
 0x2ba   :  { %756 = vsyncpa [#allocation3], 1 }
 0x2bb   :  { %757 = vsyncpa [#allocation6], 1 }
 0x2bc   :  { %758 = vsyncpa [#allocation9], 1 }
 0x2bd   :  { %759 = vsyncpa [#allocation4], 1 }

</bundles_post_ra>
